<compile_context>
chip_gen: v6e
topology: v6e:2x2x1
jax: 0.10.0
libtpu: 0.0.40
codegen_flags: <defaults>
</compile_context>

<pallas_src>
import functools

import jax
import jax.numpy as jnp
import numpy as np
from jax import lax
from jax.experimental import pallas as pl
from jax.experimental.pallas import tpu as pltpu


def _full_spec(shape):
    nd = len(shape)
    return pl.BlockSpec(shape, lambda *_: (0,) * nd)


# ---------------------------------------------------------------------------
# Kernel 1: hoisted fused phi/g projection (+ constant ones row).
# ---------------------------------------------------------------------------
def _phig_proj_kernel(pgw_ref, pgb_ref, x_ref, o_ref):
    # o[r, n] = sum_c pgw[r, c] * x[c, n] + pgb[r]
    # rows: [0, IP) = phi, [IP, 2*IP) = g, row 2*IP = ones (zero weight, bias 1)
    o_ref[0] = (jnp.dot(pgw_ref[...], x_ref[0],
                        preferred_element_type=jnp.float32)
                + pgb_ref[...]).astype(o_ref.dtype)


# ---------------------------------------------------------------------------
# Kernel 2: flash-style attention + output projection + residual.
# ---------------------------------------------------------------------------
def _attn_kernel(ip, single_kv, exp_dtype,
                 xq_ref, phig_ref, tw_ref, tb_ref, ww_ref, wb_ref,
                 o_ref, th_s, m_s, acc_s):
    f32 = jnp.float32

    def project_theta():
        # theta[q, i] = sum_c x[c, q] * tw[i, c] + tb[i]   ->  (TQ, IP)
        # (TQ, IP) is the canonical LHS layout for the score matmul, so any
        # relayout happens once per q tile instead of once per kv step.
        return lax.dot_general(xq_ref[0], tw_ref[...],
                               (((0,), (1,)), ((), ())),
                               preferred_element_type=f32) + tb_ref[...]

    def softmax_exp(z):
        if exp_dtype == jnp.float32:
            return jnp.exp(z)
        # bf16 EUP path (v6e/v7x only); accumulation stays f32 downstream.
        return jnp.exp(z.astype(exp_dtype)).astype(f32)

    def pv_matmul(p, g1):
        # acc[q, i] = sum_k p[q, k] * g1[i, k].  g1's last row is all ones, so
        # column IP of the result is the softmax row-sum -> the reduction runs
        # on the (idle) MXU instead of the XLU.
        return lax.dot_general(p, g1, (((1,), (1,)), ((), ())),
                               preferred_element_type=f32)          # (TQ, IP+1)

    def finalize(acc):
        l = acc[:, ip:ip + 1]                                       # (TQ, 1)
        inv_l = pl.reciprocal(l, approx=True)                       # EUP slot
        inv_l = inv_l * (2.0 - l * inv_l)                           # 1 Newton step
        y = acc[:, 0:ip] * inv_l                                    # (TQ, IP)
        # out[c, q] = sum_i W[c, i] * y[q, i]  (+ bias, + residual)
        wy = lax.dot_general(ww_ref[...], y, (((1,), (1,)), ((), ())),
                             preferred_element_type=f32)            # (C, TQ)
        o_ref[0] = (wy + wb_ref[...] + xq_ref[0]).astype(o_ref.dtype)

    phig = phig_ref[0]                                              # (2*IP+1, TK)
    phi = phig[0:ip, :]                                             # (IP, TK)
    g1 = phig[ip:, :]                                               # (IP+1, TK)

    if single_kv:
        # Small-N fast path: one kv tile covers all positions -> plain one-pass
        # softmax, no online-update state, no scratch round trips.
        theta = project_theta()
        s = jnp.dot(theta, phi, preferred_element_type=f32)         # (TQ, TK)
        p = softmax_exp(s - jnp.max(s, axis=-1, keepdims=True))
        finalize(pv_matmul(p, g1))
    else:
        ki = pl.program_id(2)

        @pl.when(ki == 0)
        def _init():
            th_s[...] = project_theta()
            m_s[...] = jnp.full_like(m_s, -jnp.inf)
            acc_s[...] = jnp.zeros_like(acc_s)

        s = jnp.dot(th_s[...], phi, preferred_element_type=f32)     # (TQ, TK)
        m_prev = m_s[...]
        m_new = jnp.maximum(m_prev, jnp.max(s, axis=-1, keepdims=True))
        alpha = jnp.exp(m_prev - m_new)                             # (TQ, 1)
        p = softmax_exp(s - m_new)                                  # (TQ, TK)
        acc_s[...] = alpha * acc_s[...] + pv_matmul(p, g1)
        m_s[...] = m_new

        @pl.when(ki == pl.num_programs(2) - 1)
        def _fin():
            finalize(acc_s[...])


def _pick_tile(n, override, preferred):
    if override is not None:
        if n % override:
            raise ValueError(f"tile {override} must divide N={n}")
        if override % 128 and override != n:
            raise ValueError("tile must be a multiple of 128 (or equal N)")
        return override
    for t in preferred:
        if t <= n and n % t == 0:
            return t
    return n  # fallback: one block spanning the full dimension


def window_attention_pallas(x_ncthw, params, *, tq=None, tk=None,
                            exp_dtype=jnp.float32):
    """Non-local block forward.  x_ncthw: (B, C, T, H, W) -> same shape.

    exp_dtype=jnp.bfloat16 enables the bf16 EUP exp path (v6e/v7x only;
    loosen comparison tolerances).  Keep the f32 default on v5e.
    """
    B, C, T, H, W = x_ncthw.shape
    N = T * H * W
    inner = params["theta_w"].shape[0]
    out_c = params["w_w"].shape[0]
    assert out_c == C, "residual requires out_channels == in_channels"
    dt = x_ncthw.dtype
    exp_dtype = jnp.dtype(exp_dtype)

    # Pad inner channels up to a sublane multiple; padded rows/cols are exact
    # zeros (zero weight AND zero bias) so they contribute nothing.
    ip = max(8, ((inner + 7) // 8) * 8)

    tw = jnp.zeros((ip, C), dt).at[:inner, :].set(params["theta_w"].astype(dt))
    tb = jnp.zeros((1, ip), dt).at[0, :inner].set(params["theta_b"].astype(dt))
    # Fused [phi; g; ones] projection: last row has zero weight and bias 1.0,
    # so the attention kernel gets the softmax row-sum for free off the MXU.
    pgw = (jnp.zeros((2 * ip + 1, C), dt)
           .at[:inner, :].set(params["phi_w"].astype(dt))
           .at[ip:ip + inner, :].set(params["g_w"].astype(dt)))
    pgb = (jnp.zeros((2 * ip + 1, 1), dt)
           .at[:inner, 0].set(params["phi_b"].astype(dt))
           .at[ip:ip + inner, 0].set(params["g_b"].astype(dt))
           .at[2 * ip, 0].set(1.0))
    ww = jnp.zeros((C, ip), dt).at[:, :inner].set(params["w_w"].astype(dt))
    wb = params["w_b"].astype(dt).reshape(C, 1)

    # Native NCTHW flattening -> (B, C, N): lane-dense everywhere, no transposes.
    x_bcn = x_ncthw.reshape(B, C, N)

    # --- tile selection ------------------------------------------------------
    # kv: a single tile when the whole kv extent fits comfortably in VMEM
    # (small-N fast path -> one-pass softmax, minimal serial grid steps).
    if tk is None:
        tk = N if N <= 2048 else _pick_tile(N, None, (1024, 512, 256, 128))
    else:
        tk = _pick_tile(N, tk, ())
    tq = _pick_tile(N, tq, (512, 256, 128))
    # v7x megacore: keep >= 2 programs on the parallel grid axes when possible.
    if B * (N // tq) < 2:
        for t in (N // 2, 512, 256, 128):
            if t >= 128 and t % 128 == 0 and N % t == 0:
                tq = t
                break
    single_kv = (N // tk) == 1

    # --- 1) hoisted phi/g projection (computed exactly once) -----------------
    tn = _pick_tile(N, None, (512, 256, 128))
    phig = pl.pallas_call(
        _phig_proj_kernel,
        out_shape=jax.ShapeDtypeStruct((B, 2 * ip + 1, N), dt),
        grid_spec=pltpu.PrefetchScalarGridSpec(
            num_scalar_prefetch=0,
            grid=(B, N // tn),
            in_specs=[
                _full_spec((2 * ip + 1, C)),                          # fused weight
                _full_spec((2 * ip + 1, 1)),                          # fused bias
                pl.BlockSpec((1, C, tn), lambda b, n: (b, 0, n)),     # x tile
            ],
            out_specs=pl.BlockSpec((1, 2 * ip + 1, tn), lambda b, n: (b, 0, n)),
        ),
        compiler_params=pltpu.CompilerParams(
            dimension_semantics=("parallel", "parallel")),
    )(pgw, pgb, x_bcn)

    # --- 2) flash attention + W projection + residual ------------------------
    grid = (B, N // tq, N // tk)
    out_bcn = pl.pallas_call(
        functools.partial(_attn_kernel, ip, single_kv, exp_dtype),
        out_shape=jax.ShapeDtypeStruct((B, C, N), dt),
        grid_spec=pltpu.PrefetchScalarGridSpec(
            num_scalar_prefetch=0,
            grid=grid,
            in_specs=[
                pl.BlockSpec((1, C, tq), lambda b, qi, ki: (b, 0, qi)),          # x (q + residual)
                pl.BlockSpec((1, 2 * ip + 1, tk), lambda b, qi, ki: (b, 0, ki)), # [phi; g; ones]
                _full_spec((ip, C)),                                             # theta weight
                _full_spec((1, ip)),                                             # theta bias
                _full_spec((C, ip)),                                             # W weight (padded)
                _full_spec((C, 1)),                                              # W bias
            ],
            out_specs=pl.BlockSpec((1, C, tq), lambda b, qi, ki: (b, 0, qi)),
            scratch_shapes=[
                pltpu.VMEM((tq, ip), jnp.float32),       # theta, (TQ, IP) layout
                pltpu.VMEM((tq, 1), jnp.float32),        # running max m
                pltpu.VMEM((tq, ip + 1), jnp.float32),   # acc | running sum l
            ]),
        compiler_params=pltpu.CompilerParams(
            dimension_semantics=("parallel", "parallel", "arbitrary"),
            vmem_limit_bytes=32 * 1024 * 1024),
    )(x_bcn, phig, tw, tb, ww, wb)

    return out_bcn.reshape(B, C, T, H, W)


def _reference(x_ncthw, params):
    """Pure-JAX reference of the same non-local block forward."""
    B, C, T, H, W = x_ncthw.shape
    N = T * H * W
    x = jnp.transpose(x_ncthw.reshape(B, C, N), (0, 2, 1))         # (B, N, C)
    theta = jnp.einsum("bnc,ic->bni", x, params["theta_w"]) + params["theta_b"]
    phi = jnp.einsum("bnc,ic->bni", x, params["phi_w"]) + params["phi_b"]
    g = jnp.einsum("bnc,ic->bni", x, params["g_w"]) + params["g_b"]
    f = jnp.einsum("bni,bmi->bnm", theta, phi)
    attn = jax.nn.softmax(f, axis=-1)
    y = jnp.einsum("bnm,bmi->bni", attn, g)
    wy = jnp.einsum("bni,oi->bno", y, params["w_w"]) + params["w_b"]
    z = wy + x
    return jnp.transpose(z, (0, 2, 1)).reshape(B, C, T, H, W)


if __name__ == "__main__":
    # Small shapes consistent with the module: 3D conv input NCTHW, N = 512.
    B, C, T, H, W = 2, 8, 4, 8, 16
    inner = C // 2                       # NONLocalBlock default: in_channels // 2
    out_c = C                            # default: out_channels == in_channels

    key = jax.random.PRNGKey(0)
    ks = jax.random.split(key, 9)
    x = jax.random.normal(ks[0], (B, C, T, H, W), dtype=jnp.float32)

    # Deterministic synthetic parameters (1x1x1 conv weights collapsed to 2-D).
    # TODO(synk): the reference repo may zero-init the final W conv (or use BN);
    # here all parameters are nonzero deterministic random values.
    params = {
        "theta_w": 0.1 * jax.random.normal(ks[1], (inner, C), jnp.float32),
        "theta_b": 0.1 * jax.random.normal(ks[2], (inner,), jnp.float32),
        "phi_w":   0.1 * jax.random.normal(ks[3], (inner, C), jnp.float32),
        "phi_b":   0.1 * jax.random.normal(ks[4], (inner,), jnp.float32),
        "g_w":     0.1 * jax.random.normal(ks[5], (inner, C), jnp.float32),
        "g_b":     0.1 * jax.random.normal(ks[6], (inner,), jnp.float32),
        "w_w":     0.1 * jax.random.normal(ks[7], (out_c, inner), jnp.float32),
        "w_b":     0.1 * jax.random.normal(ks[8], (out_c,), jnp.float32),
    }

    ref = jax.block_until_ready(_reference(x, params))

    # 1) Auto config: N=512 -> single-kv-tile fast path, attention grid (B, 1, 1).
    out_fast = jax.block_until_ready(window_attention_pallas(x, params))
    assert out_fast.shape == (B, C, T, H, W)
    err = float(np.max(np.abs(np.asarray(out_fast) - np.asarray(ref))))
    assert np.allclose(np.asarray(out_fast), np.asarray(ref),
                       rtol=2e-4, atol=2e-4), f"fast path max err {err}"

    # 2) Forced multi-tile config: exercises the online-softmax flash path.
    out_flash = jax.block_until_ready(
        window_attention_pallas(x, params, tq=128, tk=128))
    err = float(np.max(np.abs(np.asarray(out_flash) - np.asarray(ref))))
    assert np.allclose(np.asarray(out_flash), np.asarray(ref),
                       rtol=2e-4, atol=2e-4), f"flash path max err {err}"

    print("KERNEL_OK")
</pallas_src>

<mosaic_0001>
module attributes {stable_mosaic.version = 11 : i64} {
  func.func @_phig_proj_kernel(%arg0: i32, %arg1: i32, %arg2: memref<17x8xf32, #tpu.memory_space<vmem>>, %arg3: memref<17x1xf32, #tpu.memory_space<vmem>>, %arg4: memref<1x8x512xf32, #tpu.memory_space<vmem>>, %arg5: memref<1x17x512xf32, #tpu.memory_space<vmem>>) attributes {dimension_semantics = [#tpu.dimension_semantics<parallel>, #tpu.dimension_semantics<parallel>], iteration_bounds = array<i64: 2, 1>, scalar_prefetch = 0 : i64, scratch_operands = 0 : i64, tpu.core_type = #tpu.core_type<tc>, window_params = [{pipeline_mode = #tpu.pipeline_mode<synchronous>, transform_indices = @transform_0, window_bounds = array<i64: 17, 8>}, {pipeline_mode = #tpu.pipeline_mode<synchronous>, transform_indices = @transform_1, window_bounds = array<i64: 17, 1>}, {transform_indices = @transform_2, window_bounds = array<i64: 1, 8, 512>}, {transform_indices = @transform_3, window_bounds = array<i64: 1, 17, 512>}]} {
    %c0 = arith.constant 0 : index
    %c0_0 = arith.constant 0 : index
    %0 = vector.load %arg2[%c0, %c0_0] : memref<17x8xf32, #tpu.memory_space<vmem>>, vector<17x8xf32>
    %c0_1 = arith.constant 0 : index
    %c0_2 = arith.constant 0 : index
    %c0_3 = arith.constant 0 : index
    %1 = vector.load %arg4[%c0_1, %c0_2, %c0_3] : memref<1x8x512xf32, #tpu.memory_space<vmem>>, vector<1x8x512xf32>
    %2 = vector.shape_cast %1 : vector<1x8x512xf32> to vector<8x512xf32>
    %cst = arith.constant dense<0.000000e+00> : vector<17x512xf32>
    %3 = tpu.matmul %0, %2, %cst {dimension_numbers = #tpu.dot_dimension_numbers<[1], [0], [0], [1], [0, 0, 1, 1], [], []>} : vector<17x8xf32>, vector<8x512xf32>, vector<17x512xf32> -> vector<17x512xf32>
    %c0_4 = arith.constant 0 : index
    %c0_5 = arith.constant 0 : index
    %4 = vector.load %arg3[%c0_4, %c0_5] : memref<17x1xf32, #tpu.memory_space<vmem>>, vector<17x1xf32>
    %5 = vector.broadcast %4 : vector<17x1xf32> to vector<17x512xf32>
    %6 = arith.addf %3, %5 : vector<17x512xf32>
    %c0_6 = arith.constant 0 : index
    %c0_7 = arith.constant 0 : index
    %c0_8 = arith.constant 0 : index
    %7 = vector.load %arg5[%c0_6, %c0_7, %c0_8] : memref<1x17x512xf32, #tpu.memory_space<vmem>>, vector<1x17x512xf32>
    %8 = vector.shape_cast %7 : vector<1x17x512xf32> to vector<17x512xf32>
    %9 = vector.shape_cast %6 : vector<17x512xf32> to vector<1x17x512xf32>
    tpu.vector_store %arg5[%c0_6, %c0_7, %c0_8], %9 {strides = array<i32>} : memref<1x17x512xf32, #tpu.memory_space<vmem>>, vector<1x17x512xf32>,
    return
  }
  func.func @transform_0(%arg0: i32, %arg1: i32) -> (i32, i32) {
    %c0_i32 = arith.constant 0 : i32
    %c0_i32_0 = arith.constant 0 : i32
    %c0_i32_1 = arith.constant 0 : i32
    return %c0_i32, %c0_i32_0 : i32, i32
  }
  func.func @transform_1(%arg0: i32, %arg1: i32) -> (i32, i32) {
    %c0_i32 = arith.constant 0 : i32
    %c0_i32_0 = arith.constant 0 : i32
    %c0_i32_1 = arith.constant 0 : i32
    return %c0_i32, %c0_i32_0 : i32, i32
  }
  func.func @transform_2(%arg0: i32, %arg1: i32) -> (i32, i32, i32) {
    %c0_i32 = arith.constant 0 : i32
    %c0_i32_0 = arith.constant 0 : i32
    return %arg0, %c0_i32, %arg1 : i32, i32, i32
  }
  func.func @transform_3(%arg0: i32, %arg1: i32) -> (i32, i32, i32) {
    %c0_i32 = arith.constant 0 : i32
    %c0_i32_0 = arith.constant 0 : i32
    return %arg0, %c0_i32, %arg1 : i32, i32, i32
  }
}

</mosaic_0001>

<bundles_post_ra>
// kernel: tpu_custom_call.1
= control target key start
LH: loop header
LB: loop body
LE: loop exit
PB: predicated region body
PF: predicated region fallthrough
CT: control target
= control target key end

     0   :  { %8 = vsyncpa [#allocation3], 0  ;;  %s845_s0 = inlined_call_operand.vmem [shape: f32[17,8], index: 0, kind: input, shape index: {}]   ;;  %s846_s1 = inlined_call_operand.vmem [shape: f32[17,1], index: 1, kind: input, shape index: {}]   ;;  %s847_s2 = inlined_call_operand.hbm [shape: f32[2,8,512], index: 2, kind: input, shape index: {}]   ;;  %s848_s3 = inlined_call_operand.vmem [shape: f32[2,17,512], index: 3, kind: output, shape index: {}]  }
   0x1   :  { %10 = vsyncpa [#allocation3 + $0x1], 0  ;;  %s707_s12 = smov 0   ;;  %s709_s13 = smov 0  }
   0x2   :  { %s711_s14 = smov 0   ;;  %s713_s15 = smov 0  }
   0x3   :  { %s715_s16 = smov 0   ;;  %s717_s17 = smov 0  }
   0x4 LB: > { %s525_s18 = sadd.s32 4294967295, %s682_s17   ;;  %s28_s19 = sadd.s32 1, %s678_s16  ;;  %s682_s17 = sphi %s717_s17, %s16_s17   ;;  %s678_s16 = sphi %s715_s16, %s856_s16   ;;  %s674_s15 = sphi %s713_s15, %s855_s15   ;;  %s670_s14 = sphi %s711_s14, %s854_s14   ;;  %s666_s13 = sphi %s709_s13, %s853_s13   ;;  %s662_s12 = sphi %s707_s12, %s852_s12  }
   0x5   : > { %p30_p0 = scmp.ge.s32.totalorder %s28_s19, 2  ;;  %s79_s20 = sadd.s32 1, %s670_s14 }
   0x6   : > { %p86_p1 = scmp.ne.s32.totalorder %s670_s14, %s666_s13  ;;  %p87_p2 = scmp.eq.s32.totalorder %s682_s17, 0 }
   0x7   : > { %s858_s19 = smov (%p30_p0, %s28_s19), 0  ;;  %p92_p4 = scmp.ne.s32.totalorder %s666_s13, %s662_s12 }
   0x8   : > { %p743_p3 = por %p87_p2, %p86_p1  ;;  %s74_s22 = ssub.s32 %s678_s16, %s858_s19 }
   0x9   : > { %p93_p5 = scmp.eq.s32.totalorder %s525_s18, 0  ;;  %p77_p6 = scmp.eq.s32.totalorder %s74_s22, 0 }
   0xa   : > { %p551_p8 = scmp.lt.s32.totalorder %s682_s17, 2  ;;  %s150_s25 = sand.u32 1, %s670_s14  }
   0xb   : > { %p750_p7 = por %p93_p5, %p92_p4  ;;  %s543_s26 = sshll.u32 %s678_s16, 9 }
   0xc   : > { %s756_s24 = scalar_select %p77_p6, %s670_s14, %s79_s20  }
   0xd   : > { %s529_s27 = sshll.u32 %s150_s25, 5  ;;  %s162_s30 = scalar_lea.hbm %s847_s2, %s543_s26 }
   0xe   : > { %s154_s4 = scalar_lea.vmem [#allocation2], %s529_s27  ;;  %p765_p9 = pnand %p551_p8, %p743_p3 }
   0xf   : > { %s164_s5 = sshll.u32 %s154_s4, 4  ;;  %p532_p10 = scmp.ge.s32.totalorder %s682_s17, 1  ;;  %s165_s5 = int_to_ptr.vmem [resolvable:$true] %s164_s5 }
  0x10   : > { %p169_p11 = scmp.lt.s32.totalorder %s682_s17, 3  ;;  %s151_s7 = scalar_lea.sflag [#allocation3], %s150_s25 }
  0x11   : > { %p606_p12 = pneg %p765_p9  ;;  %s617_s8 = scalar_lea.vmem %s165_s5, 512 }
  0x12   : > { %p618_p13 = scmp.ne.s32.totalorder %s165_s5, %s617_s8  ;;  %s684_s9 = smov [#allocation2]  }
  0x13   : > { %s622_s10 = sshll.u32 %s684_s9, 4  ;;  %s623_s10 = int_to_ptr.vmem [resolvable:$false] %s622_s10 }
  0x14   : > { %p620_p0 = pnand %p618_p13, %p606_p12  ;;  %s624_s11 = scalar_lea.vmem %s623_s10, 1024 }
  0x15   : > { %p625_p2 = scmp.lt.s32.totalorder %s165_s5, %s623_s10  ;;  %p626_p3 = scmp.lt.s32.totalorder %s624_s11, %s617_s8 }
  0x16   : > { %p621_p1 = pneg %p620_p0 }
  0x17   : > { %p627_p4 = por %p626_p3, %p625_p2 }
  0x19   : > { %p628_p5 = pnand %p627_p4, %p621_p1 }
  0x1b   : > { %631 = shalt.err (!%p628_p5)
}
  0x1c   : > { %550 = dma.hbm_to_vmem [thread:$0]  (!%p765_p9), %s162_s30, 512, %s165_s5, %s151_s7  }
  0x1d   : > { %p170_p6 = pnand %p532_p10, %p169_p11 }
  0x1e   : > { %s175_s12 = sand.u32 (!%p170_p6), 1, %s666_s13  }
  0x1f   : > { %173 = sbr.rel (%p170_p6) target bundleno = 248 (0xf8), region = 32  ;;  %s533_s18 = sshll.u32 (!%p170_p6), %s175_s12, 5 }
  0x20   : > { %s176_s20 = scalar_lea.sflag (!%p170_p6), [#allocation3], %s175_s12  ;;  %s179_s21 = scalar_lea.vmem (!%p170_p6), [#allocation2], %s533_s18 }
  0x24   : > { %657 = dma.done.wait (%p750_p7), %s176_s20, 512  }
  0x25   : > { %659 = vsyncadd (%p750_p7), %s176_s20, 4294966784  ;;  %v685_v0 = vmov 0.0   ;;  %v686_v1 = vmov 0   ;;  %v221_v2 = vld [vmem:[%s179_s21 + $0x8] sm:$0xff]  ;;  %v223_v3 = vld [vmem:[%s179_s21 + $0x18] sm:$0xff]  ;;  %vm242_vm0 = vcmask 64512  }
  0x26   : > { %316 = vmatprep.mubr.f32.mxu0 %v685_v0  ;;  %399 = vmatprep.mubr.f32.mxu1 %v685_v0  ;;  %v220_v4 = vld [vmem:[%s179_s21] sm:$0xff]  ;;  %v222_v5 = vld [vmem:[%s179_s21 + $0x10] sm:$0xff]  ;;  %v218_v9 = vld [vmem:[%s845_s0 + $0x8] sm:$0xff]  ;;  %p208_p7 = scmp.lt.s32.totalorder %s674_s15, 1 }
  0x27   : > { %602 = vset.pattern.permute.xlu0 %v686_v1  ;;  %603 = vset.pattern.permute.xlu1 %v686_v1  ;;  %v217_v6 = vld [vmem:[%s845_s0] sm:$0xff]  ;;  %v226_v8 = vld [vmem:[%s846_s1 + $0x10] sm:$0x1]  ;;  %v225_v10 = vld [vmem:[%s846_s1 + $0x8] sm:$0xff] }
  0x28   : > { %282 = vmatprep.subr.mxu0 %v221_v2  ;;  %365 = vmatprep.subr.mxu1 %v223_v3  ;;  %v224_v7 = vld [vmem:[%s846_s1] sm:$0xff]  ;;  %v219_v11 = vld [vmem:[%s845_s0 + $0x10] sm:$0x1]  ;;  %s860_s15 = smov (!%p208_p7, %s674_s15), 1 }
  0x29   : > { %283 = vmatpush1.msra.mxu0 %v220_v4  ;;  %366 = vmatpush1.msra.mxu1 %v222_v5  ;;  %s544_s8 = smul.u32 96, %s860_s15 }
  0x2a   : > { %535 = vmatmul.mubr.msk.f32.vlgmr.msra.gmra.mxu0 %vm242_vm0, %v217_v6  ;;  %538 = vmatmul.mubr.msk.f32.vlgmr.msra.gmra.mxu1 %vm242_vm0, %v217_v6 }
  0x2b   : > { %322 = vmatprep.mubr.f32.mxu0 %v685_v0  ;;  %405 = vmatprep.mubr.f32.mxu1 %v685_v0  ;;  %s813_s11 = scalar_lea.vmem %s848_s3, %s544_s8 }
  0x2c   : > { %229 = vperm.xlu0 %602, %v224_v7   ;;  %239 = vperm.xlu1 %603, %v226_v8  }
  0x2e   : > { %536 = vmatmul.mubr.msk.f32.gmra.mxu0 %vm242_vm0, %v218_v9  ;;  %539 = vmatmul.mubr.msk.f32.gmra.mxu1 %vm242_vm0, %v218_v9 }
  0x2f   : > { %328 = vmatprep.mubr.f32.mxu0 %v685_v0  ;;  %411 = vmatprep.mubr.f32.mxu1 %v685_v0 }
  0x30   : > { %234 = vperm.xlu0 %602, %v225_v10  }
  0x32   : > { %537 = vmatmul.mubr.msk.f32.gmra.mxu0 %vm242_vm0, %v219_v11  ;;  %540 = vmatmul.mubr.msk.f32.gmra.mxu1 %vm242_vm0, %v219_v11 }
  0xa7   : > { %v230_v12 = vpop.permute.xlu0 %229  ;;  %v240_v26 = vpop.permute.xlu1 %239 }
  0xab   : > { %v235_v17 = vpop.permute.xlu0 %234 }
  0xea   : > { %v318_v13 = vpop.f32.mrf.mxu0  ;;  %v401_v14 = vpop.f32.mrf.mxu1 }
  0xeb   : > { %v319_v15 = vadd.f32 %v318_v13, %v230_v12  ;;  %v402_v16 = vadd.f32 %v401_v14, %v230_v12 }
  0xec   : > { %v320_v18 = vpop.f32.mrf.mxu0  ;;  %v403_v19 = vpop.f32.mrf.mxu1 }
  0xed   : > { %418 = vst [vmem:[%s813_s11] sm:$0xff] %v319_v15  ;;  %420 = vst [vmem:[%s813_s11 + $0x10] sm:$0xff] %v402_v16  ;;  %v321_v20 = vadd.f32 %v320_v18, %v230_v12  ;;  %v404_v21 = vadd.f32 %v403_v19, %v230_v12 }
  0xee   : > { %v324_v22 = vpop.f32.mrf.mxu0  ;;  %v407_v23 = vpop.f32.mrf.mxu1 }
  0xef   : > { %419 = vst [vmem:[%s813_s11 + $0x8] sm:$0xff] %v321_v20  ;;  %421 = vst [vmem:[%s813_s11 + $0x18] sm:$0xff] %v404_v21  ;;  %v325_v24 = vadd.f32 %v324_v22, %v235_v17  ;;  %v408_v25 = vadd.f32 %v407_v23, %v235_v17 }
  0xf0   : > { %v326_v27 = vpop.f32.mrf.mxu0  ;;  %v409_v28 = vpop.f32.mrf.mxu1 }
  0xf1   : > { %422 = vst [vmem:[%s813_s11 + $0x20] sm:$0xff] %v325_v24  ;;  %424 = vst [vmem:[%s813_s11 + $0x30] sm:$0xff] %v408_v25  ;;  %v327_v29 = vadd.f32 %v326_v27, %v235_v17  ;;  %v410_v30 = vadd.f32 %v409_v28, %v235_v17 }
  0xf2   : > { %v330_v31 = vpop.f32.mrf.mxu0  ;;  %v413_v32 = vpop.f32.mrf.mxu1 }
  0xf3   : > { %423 = vst [vmem:[%s813_s11 + $0x28] sm:$0xff] %v327_v29  ;;  %425 = vst [vmem:[%s813_s11 + $0x38] sm:$0xff] %v410_v30  ;;  %v331_v33 = vadd.f32 %v330_v31, %v240_v26  ;;  %v414_v34 = vadd.f32 %v413_v32, %v240_v26 }
  0xf4   : > { %v332_v35 = vpop.f32.mrf.mxu0  ;;  %v415_v36 = vpop.f32.mrf.mxu1 }
  0xf5   : > { %426 = vst [vmem:[%s813_s11 + $0x40] sm:$0x1] %v331_v33  ;;  %428 = vst [vmem:[%s813_s11 + $0x50] sm:$0x1] %v414_v34  ;;  %v333_v37 = vadd.f32 %v332_v35, %v240_v26  ;;  %v416_v38 = vadd.f32 %v415_v36, %v240_v26 }
  0xf7   : > { %427 = vst [vmem:[%s813_s11 + $0x48] sm:$0x1] %v333_v37  ;;  %429 = vst [vmem:[%s813_s11 + $0x58] sm:$0x1] %v416_v38 }
  0xf8 PF: > { %s16_s17 = sadd.s32 1, %s682_s17   ;;  %s852_s12 = smov %s666_s13 }
  0xf9   : > { %p13_p8 = scmp.ge.s32.totalorder %s16_s17, 4   ;;  %s853_s13 = smov %s670_s14 }
  0xfa   : > { %s854_s14 = smov %s756_s24  ;;  %s855_s15 = smov %s678_s16 }
  0xfb   : > { %s856_s16 = smov %s858_s19  ;;  %15 = sbr.rel (!%p13_p8) target bundleno = 4 (0x4), region = 72 }
 0x100   :  { %460 = vsyncpa [#allocation3], 1 }
 0x101   :  { %462 = vsyncpa [#allocation3 + $0x1], 1 }

</bundles_post_ra>
